<compile_context>
chip_gen: v7x
topology: tpu7x:2x2x1
jax: 0.10.0
libtpu: 0.0.40
codegen_flags: <defaults>
</compile_context>

<pallas_src>
import functools
import itertools

import numpy as np
import jax
import jax.numpy as jnp
from jax.experimental import pallas as pl
from jax.experimental.pallas import tpu as pltpu


def _round_up(x, m):
    return ((x + m - 1) // m) * m


def _cost_kernel(logits_ref, sim_ref, onehot_ref, tgt_t_ref, tgt_sq_ref,
                 c_ref, *, w_code, class_dot_dtype, code_dot_dtype):
    # logits_ref : (TM, Cp)   f32  — padded class logits (padding = -1e30)
    # sim_ref    : (TM, NBp)  f32  — membership rows, dummy mask already folded
    # onehot_ref : (Cp, Tp)   class_dot_dtype — one-hot(tgt_ids) * (-w_class)
    # tgt_t_ref  : (NBp, Tp)  code_dot_dtype  — targets^T * (-2)
    # tgt_sq_ref : (1, Tp)    f32  — ||target||^2 row norms
    # c_ref      : (TM, Tp)   f32
    logits = logits_ref[...]

    # Row softmax over classes; divide replaced by EUP approx reciprocal.
    m = jnp.max(logits, axis=-1, keepdims=True)
    e = jnp.exp(logits - m)
    denom = jnp.sum(e, axis=-1, keepdims=True)
    prob = e * pl.reciprocal(denom, approx=True)

    # w_class * cost_class  ==  prob @ (-w_class * onehot)    (MXU gather)
    class_term = jnp.dot(prob.astype(class_dot_dtype), onehot_ref[...],
                         preferred_element_type=jnp.float32)      # (TM, Tp)

    # cost_code = cdist(sim, tgt, p=2) via Gram expansion (MXU contraction).
    # Kept in f32 by default: the ||a||^2+||b||^2-2ab cancellation makes bf16
    # operands unsafe for small distances (Hungarian tie flips).
    sim = sim_ref[...]
    sim_sq = jnp.sum(sim * sim, axis=-1, keepdims=True)           # (TM, 1)
    gram_m2 = jnp.dot(sim.astype(code_dot_dtype), tgt_t_ref[...],
                      preferred_element_type=jnp.float32)         # == -2 a.b
    sq = jnp.maximum(sim_sq + tgt_sq_ref[...] + gram_m2, 0.0)

    # NOTE: class/code matmuls intentionally not fused (sqrt is between them).
    if w_code >= 0.0:
        w2 = w_code * w_code
        code_term = jnp.sqrt(sq if w2 == 1.0 else sq * w2)
    else:
        code_term = w_code * jnp.sqrt(sq)

    c_ref[...] = class_term + code_term


def hungarian_cost_matrix(pred_logits, membership, dummy_idx, tgt_ids,
                          tgt_members, *, cost_class=1.0, cost_code=1.0,
                          class_dot_dtype=jnp.bfloat16,
                          code_dot_dtype=jnp.float32,
                          row_tile=256):
    """Returns C of shape (B, Q, T) — the matching cost matrix."""
    assert cost_class != 0 or cost_code != 0, "all costs cant be 0"
    bs, nq, nc = pred_logits.shape
    nb = membership.shape[-1]
    t = tgt_members.shape[0]

    # ---- tiling / padding ---------------------------------------------------
    # Rows = flattened (B, Q).  Only the output lane dim T is padded to 128
    # (unmasked stores); contraction dims C / NB are padded merely to 16 —
    # ~16x less HBM traffic than padding them to 128 when they are small.
    m_rows = bs * nq
    if m_rows <= row_tile:
        tm = _round_up(max(m_rows, 8), 8)
        m_pad = tm
        n_blocks = 1
    else:
        tm = row_tile                        # 256 fills the 256x256 MXU (v6e/v7x)
        n_blocks = pl.cdiv(m_rows, tm)
        if n_blocks % 2:                     # keep both v7x TensorCores busy
            n_blocks += 1
        m_pad = n_blocks * tm
    c_pad = _round_up(nc, 16)
    nb_pad = _round_up(nb, 16)
    t_pad = _round_up(t, 128)

    # ---- batch-variant inputs: fold dummy mask, flatten (B,Q)->rows, pad ----
    sim = membership.astype(jnp.float32)
    if dummy_idx is not None:
        # fold per-batch dummy mask here — no extra (B*Q, NB) input stream
        sim = sim * dummy_idx.astype(jnp.float32)
    sim = sim.reshape(m_rows, nb)
    sim = jnp.pad(sim, ((0, m_pad - m_rows), (0, nb_pad - nb)))

    logits = pred_logits.reshape(m_rows, nc).astype(jnp.float32)
    logits = jnp.pad(logits, ((0, m_pad - m_rows), (0, c_pad - nc)),
                     constant_values=-1e30)              # exp -> 0 in padding

    # ---- batch-invariant operands, hoisted out of the grid loop -------------
    # TODO(synk): like the torch gather, tgt_ids are assumed to lie in [0, C).
    ids = jnp.reshape(tgt_ids, (-1,)).astype(jnp.int32)
    ids = jnp.pad(ids, (0, t_pad - t), constant_values=-1)      # never matches
    iota_c = jnp.arange(c_pad, dtype=jnp.int32)
    onehot = (iota_c[:, None] == ids[None, :]).astype(jnp.float32)
    onehot = (-float(cost_class) * onehot).astype(class_dot_dtype)   # (Cp, Tp)

    tgt = tgt_members.astype(jnp.float32)
    tgt = jnp.pad(tgt, ((0, t_pad - t), (0, nb_pad - nb)))
    tgt_sq = jnp.sum(tgt * tgt, axis=-1)[None, :]                # (1, Tp) f32
    tgt_t_m2 = (-2.0 * tgt.T).astype(code_dot_dtype)             # (NBp, Tp)

    kernel = functools.partial(_cost_kernel, w_code=float(cost_code),
                               class_dot_dtype=class_dot_dtype,
                               code_dot_dtype=code_dot_dtype)

    # Explicit VMEM budget: double-buffered row tiles + output, constants
    # counted at worst case (2 buffers).  Keep below v7x's 64 MiB physical
    # VMEM; raise above v5e's 16 MiB scoped default.
    cls_b = jnp.dtype(class_dot_dtype).itemsize
    cod_b = jnp.dtype(code_dot_dtype).itemsize
    vmem_need = (2 * tm * (c_pad + nb_pad) * 4            # row input tiles
                 + 2 * tm * t_pad * 4                     # output tiles
                 + 2 * (c_pad * t_pad * cls_b
                        + nb_pad * t_pad * cod_b
                        + 8 * t_pad * 4))
    vmem_limit = int(min(96 * 2 ** 20, max(32 * 2 ** 20, 2 * vmem_need)))

    def _run(single_buffer_consts):
        const_kw = ({"pipeline_mode": pl.Buffered(1)}
                    if single_buffer_consts else {})
        return pl.pallas_call(
            kernel,
            out_shape=jax.ShapeDtypeStruct((m_pad, t_pad), jnp.float32),
            grid=(n_blocks,),
            in_specs=[
                pl.BlockSpec((tm, c_pad), lambda i: (i, 0)),      # logits rows
                pl.BlockSpec((tm, nb_pad), lambda i: (i, 0)),     # sim rows
                pl.BlockSpec((c_pad, t_pad), lambda i: (0, 0), **const_kw),
                pl.BlockSpec((nb_pad, t_pad), lambda i: (0, 0), **const_kw),
                pl.BlockSpec((1, t_pad), lambda i: (0, 0), **const_kw),
            ],
            out_specs=pl.BlockSpec((tm, t_pad), lambda i: (i, 0)),
            compiler_params=pltpu.CompilerParams(
                dimension_semantics=("parallel",),
                vmem_limit_bytes=vmem_limit),
        )(logits, sim, onehot, tgt_t_m2, tgt_sq)

    try:
        c_padded = _run(True)
    except Exception:
        # pipeline_mode / pl.Buffered not supported by this jax build — fall
        # back to default double-buffered constants (identical results).
        c_padded = _run(False)

    # drop padded rows / padded target columns, restore (B, Q, T)
    return c_padded[:m_rows, :t].reshape(bs, nq, t)


def linear_sum_assignment_host(cost):
    """Hungarian assignment on host (scipy if available, brute force fallback)."""
    cost = np.asarray(cost, np.float64)
    try:
        from scipy.optimize import linear_sum_assignment as lsa
        r, c = lsa(cost)
        return np.asarray(r, np.int64), np.asarray(c, np.int64)
    except Exception:
        # TODO(synk): brute-force fallback only valid for small demo sizes.
        nr, ncol = cost.shape
        best_rows, best_cost = None, np.inf
        cols = list(range(ncol))
        for perm in itertools.permutations(range(nr), ncol):
            s = cost[list(perm), cols].sum()
            if s < best_cost:
                best_cost, best_rows = s, perm
        rows = np.asarray(best_rows, np.int64)
        col_arr = np.arange(ncol, dtype=np.int64)
        order = np.argsort(rows)
        return rows[order], col_arr[order]


def reference_cost(pred_logits, membership, dummy_idx, tgt_ids, tgt_members,
                   w_class=1.0, w_code=1.0):
    logits = np.asarray(pred_logits, np.float64)
    bs, nq, nc = logits.shape
    nb = membership.shape[-1]
    x = logits.reshape(bs * nq, nc)
    x = x - x.max(-1, keepdims=True)
    prob = np.exp(x) / np.exp(x).sum(-1, keepdims=True)
    cost_class = -prob[:, np.asarray(tgt_ids).ravel()]
    sim = np.asarray(membership, np.float64)
    if dummy_idx is not None:
        sim = sim * np.asarray(dummy_idx, np.float64)
    sim = sim.reshape(bs * nq, nb)
    diff = sim[:, None, :] - np.asarray(tgt_members, np.float64)[None, :, :]
    cost_code = np.sqrt((diff * diff).sum(-1))
    t = tgt_members.shape[0]
    return (w_class * cost_class + w_code * cost_code).reshape(bs, nq, t)


if __name__ == "__main__":
    key = jax.random.PRNGKey(0)
    bs, nq, nc, nb = 2, 8, 8, 8          # batch, num_queries, num_classes, num_boxes
    sizes = [3, 4]                        # targets per batch element
    T = sum(sizes)
    w_class, w_code = 1.0, 1.0

    k1, k2, k3, k4, k5 = jax.random.split(key, 5)
    pred_activities = jax.random.normal(k1, (bs, nq, nc), jnp.float32)
    membership = jax.random.normal(k2, (bs, nq, nb), jnp.float32)
    tgt_ids = jax.random.randint(k3, (1, T), 0, nc).astype(jnp.int32)
    tgt_members = jax.random.normal(k4, (T, nb), jnp.float32)
    dummy_idx = (jax.random.uniform(k5, (bs, 1, nb)) > 0.3).astype(jnp.float32)

    C = hungarian_cost_matrix(pred_activities, membership, dummy_idx,
                              tgt_ids, tgt_members,
                              cost_class=w_class, cost_code=w_code)
    C = jax.block_until_ready(C)

    # correctness check against a pure numpy reference of the torch forward
    # (tolerances account for bf16 class matmul + approx reciprocal)
    C_ref = reference_cost(pred_activities, membership, dummy_idx,
                           tgt_ids, tgt_members, w_class, w_code)
    assert np.allclose(np.asarray(C), C_ref, rtol=5e-2, atol=1e-1), "mismatch"

    # final step of forward(): per-batch Hungarian assignment on the host slice
    Cn = np.asarray(C)
    offsets = np.cumsum([0] + sizes)
    indices = []
    for i in range(bs):
        ci = Cn[i, :, offsets[i]:offsets[i + 1]]
        indices.append(linear_sum_assignment_host(ci))

    assert len(indices) == bs
    for r, c in indices:
        assert r.dtype == np.int64 and c.dtype == np.int64

    print("KERNEL_OK")
</pallas_src>

<mosaic_0001>
module attributes {stable_mosaic.version = 11 : i64} {
  func.func @_cost_kernel(%arg0: i32, %arg1: memref<16x16xf32, #tpu.memory_space<vmem>>, %arg2: memref<16x16xf32, #tpu.memory_space<vmem>>, %arg3: memref<16x128xbf16, #tpu.memory_space<vmem>>, %arg4: memref<16x128xf32, #tpu.memory_space<vmem>>, %arg5: memref<1x128xf32, #tpu.memory_space<vmem>>, %arg6: memref<16x128xf32, #tpu.memory_space<vmem>>) attributes {dimension_semantics = [#tpu.dimension_semantics<parallel>], iteration_bounds = array<i64: 1>, scalar_prefetch = 0 : i64, scratch_operands = 0 : i64, tpu.core_type = #tpu.core_type<tc>, window_params = [{transform_indices = @transform_0, window_bounds = array<i64: 16, 16>}, {transform_indices = @transform_1, window_bounds = array<i64: 16, 16>}, {pipeline_mode = #tpu.pipeline_mode<synchronous>, transform_indices = @transform_2, window_bounds = array<i64: 16, 128>}, {pipeline_mode = #tpu.pipeline_mode<synchronous>, transform_indices = @transform_3, window_bounds = array<i64: 16, 128>}, {pipeline_mode = #tpu.pipeline_mode<synchronous>, transform_indices = @transform_4, window_bounds = array<i64: 1, 128>}, {transform_indices = @transform_5, window_bounds = array<i64: 16, 128>}]} {
    %c0 = arith.constant 0 : index
    %c0_0 = arith.constant 0 : index
    %0 = vector.load %arg1[%c0, %c0_0] : memref<16x16xf32, #tpu.memory_space<vmem>>, vector<16x16xf32>
    %cst = arith.constant dense<0xFF800000> : vector<16xf32>
    %1 = vector.multi_reduction <maximumf>, %0, %cst [1] : vector<16x16xf32> to vector<16xf32>
    %2 = vector.shape_cast %1 : vector<16xf32> to vector<16x1xf32>
    %3 = vector.broadcast %2 : vector<16x1xf32> to vector<16x16xf32>
    %4 = arith.subf %0, %3 : vector<16x16xf32>
    %5 = math.exp %4 : vector<16x16xf32>
    %cst_1 = arith.constant dense<0.000000e+00> : vector<16xf32>
    %6 = vector.multi_reduction <add>, %5, %cst_1 [1] : vector<16x16xf32> to vector<16xf32>
    %7 = vector.shape_cast %6 : vector<16xf32> to vector<16x1xf32>
    %8 = tpu.reciprocal %7 {approx = true} : vector<16x1xf32> -> vector<16x1xf32>
    %9 = vector.broadcast %8 : vector<16x1xf32> to vector<16x16xf32>
    %10 = arith.mulf %5, %9 : vector<16x16xf32>
    %11 = arith.truncf %10 : vector<16x16xf32> to vector<16x16xbf16>
    %c0_2 = arith.constant 0 : index
    %c0_3 = arith.constant 0 : index
    %12 = vector.load %arg3[%c0_2, %c0_3] : memref<16x128xbf16, #tpu.memory_space<vmem>>, vector<16x128xbf16>
    %cst_4 = arith.constant dense<0.000000e+00> : vector<16x128xf32>
    %13 = tpu.matmul %11, %12, %cst_4 {dimension_numbers = #tpu.dot_dimension_numbers<[1], [0], [0], [1], [0, 0, 1, 1], [], []>} : vector<16x16xbf16>, vector<16x128xbf16>, vector<16x128xf32> -> vector<16x128xf32>
    %c0_5 = arith.constant 0 : index
    %c0_6 = arith.constant 0 : index
    %14 = vector.load %arg2[%c0_5, %c0_6] : memref<16x16xf32, #tpu.memory_space<vmem>>, vector<16x16xf32>
    %15 = arith.mulf %14, %14 : vector<16x16xf32>
    %cst_7 = arith.constant dense<0.000000e+00> : vector<16xf32>
    %16 = vector.multi_reduction <add>, %15, %cst_7 [1] : vector<16x16xf32> to vector<16xf32>
    %17 = vector.shape_cast %16 : vector<16xf32> to vector<16x1xf32>
    %c0_8 = arith.constant 0 : index
    %c0_9 = arith.constant 0 : index
    %18 = vector.load %arg4[%c0_8, %c0_9] : memref<16x128xf32, #tpu.memory_space<vmem>>, vector<16x128xf32>
    %cst_10 = arith.constant dense<0.000000e+00> : vector<16x128xf32>
    %19 = tpu.matmul %14, %18, %cst_10 {dimension_numbers = #tpu.dot_dimension_numbers<[1], [0], [0], [1], [0, 0, 1, 1], [], []>} : vector<16x16xf32>, vector<16x128xf32>, vector<16x128xf32> -> vector<16x128xf32>
    %c0_11 = arith.constant 0 : index
    %c0_12 = arith.constant 0 : index
    %20 = vector.load %arg5[%c0_11, %c0_12] : memref<1x128xf32, #tpu.memory_space<vmem>>, vector<1x128xf32>
    %21 = vector.broadcast %17 : vector<16x1xf32> to vector<16x128xf32>
    %22 = vector.broadcast %20 : vector<1x128xf32> to vector<16x128xf32>
    %23 = arith.addf %21, %22 : vector<16x128xf32>
    %24 = arith.addf %23, %19 : vector<16x128xf32>
    %cst_13 = arith.constant 0.000000e+00 : f32
    %25 = vector.broadcast %cst_13 : f32 to vector<16x128xf32>
    %26 = arith.maximumf %24, %25 : vector<16x128xf32>
    %27 = math.sqrt %26 : vector<16x128xf32>
    %28 = arith.addf %13, %27 : vector<16x128xf32>
    %c0_14 = arith.constant 0 : index
    %c0_15 = arith.constant 0 : index
    %29 = vector.load %arg6[%c0_14, %c0_15] : memref<16x128xf32, #tpu.memory_space<vmem>>, vector<16x128xf32>
    tpu.vector_store %arg6[%c0_14, %c0_15], %28 {strides = array<i32>} : memref<16x128xf32, #tpu.memory_space<vmem>>, vector<16x128xf32>,
    return
  }
  func.func @transform_0(%arg0: i32) -> (i32, i32) {
    %c0_i32 = arith.constant 0 : i32
    %c0_i32_0 = arith.constant 0 : i32
    return %arg0, %c0_i32 : i32, i32
  }
  func.func @transform_1(%arg0: i32) -> (i32, i32) {
    %c0_i32 = arith.constant 0 : i32
    %c0_i32_0 = arith.constant 0 : i32
    return %arg0, %c0_i32 : i32, i32
  }
  func.func @transform_2(%arg0: i32) -> (i32, i32) {
    %c0_i32 = arith.constant 0 : i32
    %c0_i32_0 = arith.constant 0 : i32
    %c0_i32_1 = arith.constant 0 : i32
    return %c0_i32, %c0_i32_0 : i32, i32
  }
  func.func @transform_3(%arg0: i32) -> (i32, i32) {
    %c0_i32 = arith.constant 0 : i32
    %c0_i32_0 = arith.constant 0 : i32
    %c0_i32_1 = arith.constant 0 : i32
    return %c0_i32, %c0_i32_0 : i32, i32
  }
  func.func @transform_4(%arg0: i32) -> (i32, i32) {
    %c0_i32 = arith.constant 0 : i32
    %c0_i32_0 = arith.constant 0 : i32
    %c0_i32_1 = arith.constant 0 : i32
    return %c0_i32, %c0_i32_0 : i32, i32
  }
  func.func @transform_5(%arg0: i32) -> (i32, i32) {
    %c0_i32 = arith.constant 0 : i32
    %c0_i32_0 = arith.constant 0 : i32
    return %arg0, %c0_i32 : i32, i32
  }
}

module attributes {stable_mosaic.version = 11 : i64} {
  func.func @_cost_kernel(%arg0: i32, %arg1: memref<16x16xf32, #tpu.memory_space<vmem>>, %arg2: memref<16x16xf32, #tpu.memory_space<vmem>>, %arg3: memref<16x128xbf16, #tpu.memory_space<vmem>>, %arg4: memref<16x128xf32, #tpu.memory_space<vmem>>, %arg5: memref<1x128xf32, #tpu.memory_space<vmem>>, %arg6: memref<16x128xf32, #tpu.memory_space<vmem>>) attributes {dimension_semantics = [#tpu.dimension_semantics<parallel>], iteration_bounds = array<i64: 1>, scalar_prefetch = 0 : i64, scratch_operands = 0 : i64, tpu.core_type = #tpu.core_type<tc>, window_params = [{transform_indices = @transform_0, window_bounds = array<i64: 16, 16>}, {transform_indices = @transform_1, window_bounds = array<i64: 16, 16>}, {pipeline_mode = #tpu.pipeline_mode<synchronous>, transform_indices = @transform_2, window_bounds = array<i64: 16, 128>}, {pipeline_mode = #tpu.pipeline_mode<synchronous>, transform_indices = @transform_3, window_bounds = array<i64: 16, 128>}, {pipeline_mode = #tpu.pipeline_mode<synchronous>, transform_indices = @transform_4, window_bounds = array<i64: 1, 128>}, {transform_indices = @transform_5, window_bounds = array<i64: 16, 128>}]} {
    %c0 = arith.constant 0 : index
    %c0_0 = arith.constant 0 : index
    %0 = vector.load %arg1[%c0, %c0_0] : memref<16x16xf32, #tpu.memory_space<vmem>>, vector<16x16xf32>
    %cst = arith.constant dense<0xFF800000> : vector<16xf32>
    %1 = vector.multi_reduction <maximumf>, %0, %cst [1] : vector<16x16xf32> to vector<16xf32>
    %2 = vector.shape_cast %1 : vector<16xf32> to vector<16x1xf32>
    %3 = vector.broadcast %2 : vector<16x1xf32> to vector<16x16xf32>
    %4 = arith.subf %0, %3 : vector<16x16xf32>
    %5 = math.exp %4 : vector<16x16xf32>
    %cst_1 = arith.constant dense<0.000000e+00> : vector<16xf32>
    %6 = vector.multi_reduction <add>, %5, %cst_1 [1] : vector<16x16xf32> to vector<16xf32>
    %7 = vector.shape_cast %6 : vector<16xf32> to vector<16x1xf32>
    %8 = tpu.reciprocal %7 {approx = true} : vector<16x1xf32> -> vector<16x1xf32>
    %9 = vector.broadcast %8 : vector<16x1xf32> to vector<16x16xf32>
    %10 = arith.mulf %5, %9 : vector<16x16xf32>
    %11 = arith.truncf %10 : vector<16x16xf32> to vector<16x16xbf16>
    %c0_2 = arith.constant 0 : index
    %c0_3 = arith.constant 0 : index
    %12 = vector.load %arg3[%c0_2, %c0_3] : memref<16x128xbf16, #tpu.memory_space<vmem>>, vector<16x128xbf16>
    %cst_4 = arith.constant dense<0.000000e+00> : vector<16x128xf32>
    %13 = tpu.matmul %11, %12, %cst_4 {dimension_numbers = #tpu.dot_dimension_numbers<[1], [0], [0], [1], [0, 0, 1, 1], [], []>} : vector<16x16xbf16>, vector<16x128xbf16>, vector<16x128xf32> -> vector<16x128xf32>
    %c0_5 = arith.constant 0 : index
    %c0_6 = arith.constant 0 : index
    %14 = vector.load %arg2[%c0_5, %c0_6] : memref<16x16xf32, #tpu.memory_space<vmem>>, vector<16x16xf32>
    %15 = arith.mulf %14, %14 : vector<16x16xf32>
    %cst_7 = arith.constant dense<0.000000e+00> : vector<16xf32>
    %16 = vector.multi_reduction <add>, %15, %cst_7 [1] : vector<16x16xf32> to vector<16xf32>
    %17 = vector.shape_cast %16 : vector<16xf32> to vector<16x1xf32>
    %c0_8 = arith.constant 0 : index
    %c0_9 = arith.constant 0 : index
    %18 = vector.load %arg4[%c0_8, %c0_9] : memref<16x128xf32, #tpu.memory_space<vmem>>, vector<16x128xf32>
    %cst_10 = arith.constant dense<0.000000e+00> : vector<16x128xf32>
    %19 = tpu.matmul %14, %18, %cst_10 {dimension_numbers = #tpu.dot_dimension_numbers<[1], [0], [0], [1], [0, 0, 1, 1], [], []>} : vector<16x16xf32>, vector<16x128xf32>, vector<16x128xf32> -> vector<16x128xf32>
    %c0_11 = arith.constant 0 : index
    %c0_12 = arith.constant 0 : index
    %20 = vector.load %arg5[%c0_11, %c0_12] : memref<1x128xf32, #tpu.memory_space<vmem>>, vector<1x128xf32>
    %21 = vector.broadcast %17 : vector<16x1xf32> to vector<16x128xf32>
    %22 = vector.broadcast %20 : vector<1x128xf32> to vector<16x128xf32>
    %23 = arith.addf %21, %22 : vector<16x128xf32>
    %24 = arith.addf %23, %19 : vector<16x128xf32>
    %cst_13 = arith.constant 0.000000e+00 : f32
    %25 = vector.broadcast %cst_13 : f32 to vector<16x128xf32>
    %26 = arith.maximumf %24, %25 : vector<16x128xf32>
    %27 = math.sqrt %26 : vector<16x128xf32>
    %28 = arith.addf %13, %27 : vector<16x128xf32>
    %c0_14 = arith.constant 0 : index
    %c0_15 = arith.constant 0 : index
    %29 = vector.load %arg6[%c0_14, %c0_15] : memref<16x128xf32, #tpu.memory_space<vmem>>, vector<16x128xf32>
    tpu.vector_store %arg6[%c0_14, %c0_15], %28 {strides = array<i32>} : memref<16x128xf32, #tpu.memory_space<vmem>>, vector<16x128xf32>,
    return
  }
  func.func @transform_0(%arg0: i32) -> (i32, i32) {
    %c0_i32 = arith.constant 0 : i32
    %c0_i32_0 = arith.constant 0 : i32
    return %arg0, %c0_i32 : i32, i32
  }
  func.func @transform_1(%arg0: i32) -> (i32, i32) {
    %c0_i32 = arith.constant 0 : i32
    %c0_i32_0 = arith.constant 0 : i32
    return %arg0, %c0_i32 : i32, i32
  }
  func.func @transform_2(%arg0: i32) -> (i32, i32) {
    %c0_i32 = arith.constant 0 : i32
    %c0_i32_0 = arith.constant 0 : i32
    %c0_i32_1 = arith.constant 0 : i32
    return %c0_i32, %c0_i32_0 : i32, i32
  }
  func.func @transform_3(%arg0: i32) -> (i32, i32) {
    %c0_i32 = arith.constant 0 : i32
    %c0_i32_0 = arith.constant 0 : i32
    %c0_i32_1 = arith.constant 0 : i32
    return %c0_i32, %c0_i32_0 : i32, i32
  }
  func.func @transform_4(%arg0: i32) -> (i32, i32) {
    %c0_i32 = arith.constant 0 : i32
    %c0_i32_0 = arith.constant 0 : i32
    %c0_i32_1 = arith.constant 0 : i32
    return %c0_i32, %c0_i32_0 : i32, i32
  }
  func.func @transform_5(%arg0: i32) -> (i32, i32) {
    %c0_i32 = arith.constant 0 : i32
    %c0_i32_0 = arith.constant 0 : i32
    return %arg0, %c0_i32 : i32, i32
  }
}

</mosaic_0001>

<bundles_post_ra>
// kernel: tpu_custom_call.1
= control target key start
LH: loop header
LB: loop body
LE: loop exit
PB: predicated region body
PF: predicated region fallthrough
CT: control target
= control target key end

     0   :  { %10 = vsyncpa [#allocation3], 0  ;;  %s598_s0 = inlined_call_operand.hbm [shape: f32[16,16], index: 0, kind: input, shape index: {}]   ;;  %s599_s1 = inlined_call_operand.hbm [shape: f32[16,16], index: 1, kind: input, shape index: {}]   ;;  %s600_s2 = inlined_call_operand.hbm [shape: bf16[16,128], index: 2, kind: input, shape index: {}]   ;;  %s601_s3 = inlined_call_operand.hbm [shape: f32[16,128], index: 3, kind: input, shape index: {}]   ;;  %s602_s4 = inlined_call_operand.vmem [shape: f32[1,128], index: 4, kind: input, shape index: {}]   ;;  %s603_s5 = inlined_call_operand.hbm [shape: f32[16,128], index: 5, kind: output, shape index: {}]  }
   0x1   :  { %11 = vsyncpa [#allocation6], 0 }
   0x2   :  { %12 = vsyncpa [#allocation9], 0 }
   0x3   :  { %13 = vsyncpa [#allocation4], 0  ;;  %s466_s18 = smov [#allocation5]   ;;  %s467_s20 = smov [#allocation2]  }
   0x4   :  { %s31_s19 = sshll.u32 %s466_s18, 4  ;;  %s19_s21 = sshll.u32 %s467_s20, 4  ;;  %s32_s19 = int_to_ptr.vmem [resolvable:$true] %s31_s19  ;;  %s507_s21 = int_to_ptr.vmem [resolvable:$true] %s19_s21 }
   0x5   :  { %s348_s24 = scalar_lea.hbm %s599_s1, 256 }
   0x6   :  { %p349_p0 = scmp.ne.s32.totalorder %s599_s1, %s348_s24  ;;  %p352_p1 = scmp.lt.u32.totalorder %s348_s24, %s599_s1 }
   0x8   :  { %p354_p2 = pnand %p352_p1, %p349_p0 }
   0xa   :  { %357 = shalt.err (!%p354_p2)
}
   0xb   :  { %s358_s29 = scalar_lea.vmem %s32_s19, 256  ;;  %p363_p4 = scmp.lt.s32.totalorder %s32_s19, %s32_s19 }
   0xc   :  { %p359_p3 = scmp.ne.s32.totalorder %s32_s19, %s358_s29  ;;  %p364_p5 = scmp.lt.s32.totalorder %s358_s29, %s358_s29 }
   0xe   :  { %p365_p6 = por %p364_p5, %p363_p4 }
  0x10   :  { %p366_p7 = pnand %p365_p6, %p359_p3 }
  0x12   :  { %369 = shalt.err (!%p366_p7)
}
  0x13   :  { %s468_s30 = smov 128   ;;  %s469_s6 = smov 8  }
  0x14   :  { %37 = dma.hbm_to_vmem [thread:$0]  %s599_s1, 256, %s32_s19, [#allocation6], %s468_s30, %s468_s30, %s469_s6  }
  0x15   :  { %s370_s11 = scalar_lea.hbm %s598_s0, 256 }
  0x16   :  { %p371_p8 = scmp.ne.s32.totalorder %s598_s0, %s370_s11  ;;  %p374_p9 = scmp.lt.u32.totalorder %s370_s11, %s598_s0 }
  0x18   :  { %p376_p10 = pnand %p374_p9, %p371_p8 }
  0x1a   :  { %379 = shalt.err (!%p376_p10)
}
  0x1b   :  { %s380_s16 = scalar_lea.vmem %s507_s21, 256  ;;  %p385_p12 = scmp.lt.s32.totalorder %s507_s21, %s507_s21 }
  0x1c   :  { %p381_p11 = scmp.ne.s32.totalorder %s507_s21, %s380_s16  ;;  %p386_p13 = scmp.lt.s32.totalorder %s380_s16, %s380_s16 }
  0x1e   :  { %p387_p0 = por %p386_p13, %p385_p12 }
  0x20   :  { %p388_p1 = pnand %p387_p0, %p381_p11 }
  0x22   :  { %391 = shalt.err (!%p388_p1)
}
  0x23   :  { %25 = dma.hbm_to_vmem [thread:$0]  %s598_s0, 256, %s507_s21, [#allocation3], %s468_s30, %s468_s30, %s469_s6  }
  0x24   :  { %s470_s18 = smov [#allocation7]   ;;  %s392_s23 = scalar_lea.hbm %s600_s2, 128 }
  0x25   :  { %s43_s19 = sshll.u32 %s470_s18, 4  ;;  %p393_p2 = scmp.ne.s32.totalorder %s600_s2, %s392_s23  ;;  %s44_s19 = int_to_ptr.vmem [resolvable:$true] %s43_s19 }
  0x26   :  { %p396_p3 = scmp.lt.u32.totalorder %s392_s23, %s600_s2 }
  0x28   :  { %p398_p4 = pnand %p396_p3, %p393_p2 }
  0x2a   :  { %401 = shalt.err (!%p398_p4)
}
  0x2b   :  { %s402_s28 = scalar_lea.vmem %s44_s19, 128  ;;  %p407_p6 = scmp.lt.s32.totalorder %s44_s19, %s44_s19 }
  0x2c   :  { %p403_p5 = scmp.ne.s32.totalorder %s44_s19, %s402_s28  ;;  %p408_p7 = scmp.lt.s32.totalorder %s402_s28, %s402_s28 }
  0x2e   :  { %p409_p8 = por %p408_p7, %p407_p6 }
  0x30   :  { %p410_p9 = pnand %p409_p8, %p403_p5 }
  0x32   :  { %413 = shalt.err (!%p410_p9)
}
  0x33   :  { %s471_s0 = smov 64   ;;  %s472_s21 = smov 4  }
  0x34   :  { %49 = dma.hbm_to_vmem [thread:$0]  %s600_s2, 128, %s44_s19, [#allocation6], %s471_s0, %s471_s0, %s472_s21  }
  0x35   :  { %s473_s8 = smov [#allocation8]   ;;  %s414_s12 = scalar_lea.hbm %s601_s3, 256 }
  0x36   :  { %s55_s9 = sshll.u32 %s473_s8, 4  ;;  %p415_p10 = scmp.ne.s32.totalorder %s601_s3, %s414_s12  ;;  %s56_s9 = int_to_ptr.vmem [resolvable:$true] %s55_s9 }
  0x37   :  { %p418_p11 = scmp.lt.u32.totalorder %s414_s12, %s601_s3 }
  0x39   :  { %p420_p12 = pnand %p418_p11, %p415_p10 }
  0x3b   :  { %423 = shalt.err (!%p420_p12)
}
  0x3c   :  { %s424_s1 = scalar_lea.vmem %s56_s9, 256  ;;  %p429_p0 = scmp.lt.s32.totalorder %s56_s9, %s56_s9 }
  0x3d   :  { %p425_p13 = scmp.ne.s32.totalorder %s56_s9, %s424_s1  ;;  %p430_p1 = scmp.lt.s32.totalorder %s424_s1, %s424_s1 }
  0x3f   :  { %p431_p2 = por %p430_p1, %p429_p0 }
  0x41   :  { %p432_p3 = pnand %p431_p2, %p425_p13 }
  0x43   :  { %435 = shalt.err (!%p432_p3)
}
  0x44   :  { %61 = dma.hbm_to_vmem [thread:$0]  %s601_s3, 256, %s56_s9, [#allocation9], %s468_s30, %s468_s30, %s469_s6  }
  0x45   :  { %458 = dma.done.wait [#allocation3], 256  }
  0x46   :  { %459 = vsyncadd [#allocation3], 4294967040 }
  0x47   :  { %460 = dma.done.wait [#allocation6], 384  }
  0x48   :  { %461 = vsyncadd [#allocation6], 4294966912 }
  0x49   :  { %462 = dma.done.wait [#allocation9], 256  }
  0x4a   :  { %463 = vsyncadd [#allocation9], 4294967040  ;;  %vm79_vm0 = vcmask 130048   ;;  %v77_v0 = vld [vmem:[#allocation2] sm:$0xff]  ;;  %v78_v1 = vld [vmem:[#allocation2 + $0x8] sm:$0xff]  ;;  %v474_v20 = vmov 0.0  }
  0x4b   :  { %v80_v2 = vsel %vm79_vm0, %v77_v0, -inf  ;;  %v83_v3 = vsel %vm79_vm0, %v78_v1, -inf  ;;  %v115_v4 = vld [vmem:[#allocation8] sm:$0xff]  ;;  %v116_v5 = vld [vmem:[#allocation8 + $0x8] sm:$0xff]  ;;  %v106_v8 = vld [vmem:[#allocation5 + $0x8] sm:$0xff]  ;;  %314 = vmatprep.subr.bf16.mxu1 %v474_v20  ;;  %vm475_vm1 = vmmov 0  }
  0x4c   :  { %81 = vmax.xlane.f32.xlu0 %v80_v2  ;;  %v105_v6 = vld [vmem:[#allocation5] sm:$0xff]  ;;  %v320_v7 = vpack.c.bf16 %v116_v5, %v115_v4  ;;  %v335_v19 = vld [vmem:[#allocation7] sm:$0xff]   ;;  %316 = vmatprep.mubr.msk.bf16.mxu1 %vm475_vm1, %v474_v20  ;;  %v108_v23 = vmul.f32 %v106_v8, %v106_v8 }
  0x4d   :  { %311 = vmatprep.mubr.msk.f32.mxu0 %vm79_vm0, %v105_v6  ;;  %315 = vmatpush3.bf16.msra.mxu1 %v335_v19  ;;  %v107_v21 = vmul.f32 %v105_v6, %v105_v6  ;;  %v298_v34 = vld [vmem:[%s602_s4] ss:$0 sm:$0xff]  ;;  %s476_s4 = smov [#allocation10]  }
  0x4e   :  { %321 = vmatprep.subr.bf16.mxu0 %v320_v7  ;;  %v112_v24 = vsel %vm79_vm0, %v108_v23, 0.0  ;;  %s282_s19 = sshll.u32 %s476_s4, 4  ;;  %s283_s19 = int_to_ptr.vmem [resolvable:$true] %s282_s19 }
  0x4f   :  { %323 = vmatpush3.bf16.msra.mxu0 %v320_v7  ;;  %v109_v22 = vsel %vm79_vm0, %v107_v21, 0.0  ;;  %s436_s20 = scalar_lea.vmem %s283_s19, 256  ;;  %p441_p5 = scmp.lt.s32.totalorder %s283_s19, %s283_s19 }
  0x50   :  { %84 = vmax.xlane.f32.xlu0 %v83_v3  ;;  %p437_p4 = scmp.ne.s32.totalorder %s283_s19, %s436_s20  ;;  %p442_p6 = scmp.lt.s32.totalorder %s436_s20, %s436_s20 }
  0x52   :  { %312 = vmatmul.mubr.msk.f32.vlgmr.msra.gmra.mrb[0].mxu0 %vm79_vm0, %v106_v8  ;;  %p443_p7 = por %p442_p6, %p441_p5 }
  0x54   :  { %110 = vadd.xlane.f32.xlu0 %v109_v22  ;;  %p444_p8 = pnand %p443_p7, %p437_p4 }
  0xd9   :  { %v82_v9 = vpop.xlane.xlu0 %81 }
  0xda   :  { %v86_v10 = vsub.f32 %v77_v0, %v82_v9 }
  0xdc   :  { %v88_v11 = vmul.f32 1.442695, %v86_v10 }
  0xdd   :  { %v85_v12 = vpop.xlane.xlu0 %84 }
  0xde   :  { %336 = vpow2.f32 %v88_v11  ;;  %v87_v13 = vsub.f32 %v78_v1, %v85_v12 }
  0xe0   :  { %v90_v14 = vmul.f32 1.442695, %v87_v13 }
  0xe1   :  { %v111_v35 = vpop.xlane.xlu0 %110 }
  0xe2   :  { %338 = vpow2.f32 %v90_v14  ;;  %v205_v37 = vadd.f32 %v298_v34, %v111_v35 }
  0xe8   :  { %v337_v15 = vpop.eup %336 }
  0xe9   :  { %v92_v16 = vsel %vm79_vm0, %v337_v15, 0.0 }
  0xea   :  { %93 = vadd.xlane.f32.xlu1 %v92_v16 }
  0xec   :  { %v339_v17 = vpop.eup %338 }
  0xed   :  { %v95_v18 = vsel %vm79_vm0, %v339_v17, 0.0 }
  0xee   :  { %96 = vadd.xlane.f32.xlu1 %v95_v18 }
  0xf2   :  { %113 = vadd.xlane.f32.xlu1 %v112_v24 }
 0x125   :  { %v313_v25 = vpop.f32.mrb[0].mxu0 }
 0x126   :  { %v189_v26 = vpop.f32.mrb[1].mxu0 }
 0x127   :  { %v207_v39 = vadd.f32 %v205_v37, %v189_v26 }
 0x129   :  { %v209_v41 = vmax.f32 %v207_v39, 0.0 }
 0x12b   :  { %vm213_vm2 = vcmp.eq.f32.partialorder %v209_v41, inf  ;;  %v216_v47 = vand.u32 2147483648, %v209_v41  ;;  %vm215_vm4 = vcmp.eq.f32.partialorder %v209_v41, 0.0 }
 0x177   :  { %v94_v27 = vpop.xlane.xlu1 %93 }
 0x178   :  { %340 = vrcp.f32 %v94_v27 }
 0x17b   :  { %v97_v28 = vpop.xlane.xlu1 %96 }
 0x17c   :  { %342 = vrcp.f32 %v97_v28 }
 0x17d   :  { %344 = vrsqrt.f32 %v209_v41 }
 0x17f   :  { %v114_v36 = vpop.xlane.xlu1 %113 }
 0x180   :  { %v206_v38 = vadd.f32 %v298_v34, %v114_v36 }
 0x182   :  { %v341_v29 = vpop.eup %340  ;;  %v208_v40 = vadd.f32 %v313_v25, %v206_v38 }
 0x183   :  { %v100_v31 = vmul.f32 %v341_v29, %v337_v15 }
 0x184   :  { %v210_v42 = vmax.f32 %v208_v40, 0.0 }
 0x186   :  { %v343_v30 = vpop.eup %342  ;;  %346 = vrsqrt.f32 %v210_v42  ;;  %vm220_vm3 = vcmp.eq.f32.partialorder %v210_v42, inf  ;;  %v223_v49 = vand.u32 2147483648, %v210_v42  ;;  %vm222_vm5 = vcmp.eq.f32.partialorder %v210_v42, 0.0 }
 0x187   :  { %v101_v32 = vmul.f32 %v343_v30, %v339_v17  ;;  %v345_v43 = vpop.eup %344 }
 0x188   :  { %v212_v45 = vmul.f32 %v345_v43, %v209_v41 }
 0x189   :  { %v102_v33 = vpack.c.bf16 %v101_v32, %v100_v31 }
 0x18a   :  { %v214_v48 = vsel %vm213_vm2, %v209_v41, %v212_v45 }
 0x18b   :  { %317 = vmatmul.mubr.msk.bf16.vlgmr.msra.gmra.mrb[0].mxu1 %vm79_vm0, %v102_v33  ;;  %v217_v51 = vsel %vm215_vm4, %v216_v47, %v214_v48 }
 0x190   :  { %v347_v44 = vpop.eup %346 }
 0x191   :  { %v219_v46 = vmul.f32 %v347_v44, %v210_v42 }
 0x193   :  { %v221_v50 = vsel %vm220_vm3, %v210_v42, %v219_v46 }
 0x194   :  { %v224_v55 = vsel %vm222_vm5, %v223_v49, %v221_v50 }
 0x25e   :  { %v268_v52 = vpop.f32.mrb[0].mxu1 }
 0x25f   :  { %v269_v53 = vadd.f32 %v268_v52, %v217_v51  ;;  %v318_v54 = vpop.f32.mrb[1].mxu1 }
 0x260   :  { %v271_v56 = vpop.f32.mrb[2].mxu1 }
 0x261   :  { %275 = vst [vmem:[#allocation10] sm:$0xff] %v269_v53  ;;  %v272_v57 = vadd.f32 %v271_v56, %v224_v55  ;;  %v319_v58 = vpop.f32.mrb[3].mxu1 }
 0x263   :  { %276 = vst [vmem:[#allocation10 + $0x8] sm:$0xff] %v272_v57 }
 0x264   :  { %447 = shalt.err (!%p444_p8)
}
 0x265   :  { %s448_s24 = scalar_lea.hbm %s603_s5, 256 }
 0x266   :  { %p449_p9 = scmp.ne.s32.totalorder %s603_s5, %s448_s24  ;;  %p452_p10 = scmp.lt.u32.totalorder %s448_s24, %s603_s5 }
 0x268   :  { %p454_p11 = pnand %p452_p10, %p449_p9 }
 0x26a   :  { %457 = shalt.err (!%p454_p11)
}
 0x26b   :  { %288 = dma.vmem_to_hbm [thread:$0]  %s283_s19, 256, %s603_s5, [#allocation4], %s468_s30, %s468_s30, %s469_s6  }
 0x26c   :  { %464 = dma.done.wait [#allocation4], 256  }
 0x26d   :  { %465 = vsyncadd [#allocation4], 4294967040 }
 0x26e   :  { %292 = vsyncpa [#allocation3], 1 }
 0x26f   :  { %293 = vsyncpa [#allocation6], 1 }
 0x270   :  { %294 = vsyncpa [#allocation9], 1 }
 0x271   :  { %295 = vsyncpa [#allocation4], 1 }

// kernel: tpu_custom_call.1
= control target key start
LH: loop header
LB: loop body
LE: loop exit
PB: predicated region body
PF: predicated region fallthrough
CT: control target
= control target key end

     0   :  { %10 = vsyncpa [#allocation3], 0  ;;  %s598_s0 = inlined_call_operand.hbm [shape: f32[16,16], index: 0, kind: input, shape index: {}]   ;;  %s599_s1 = inlined_call_operand.hbm [shape: f32[16,16], index: 1, kind: input, shape index: {}]   ;;  %s600_s2 = inlined_call_operand.hbm [shape: bf16[16,128], index: 2, kind: input, shape index: {}]   ;;  %s601_s3 = inlined_call_operand.hbm [shape: f32[16,128], index: 3, kind: input, shape index: {}]   ;;  %s602_s4 = inlined_call_operand.vmem [shape: f32[1,128], index: 4, kind: input, shape index: {}]   ;;  %s603_s5 = inlined_call_operand.hbm [shape: f32[16,128], index: 5, kind: output, shape index: {}]  }
   0x1   :  { %11 = vsyncpa [#allocation6], 0 }
   0x2   :  { %12 = vsyncpa [#allocation9], 0 }
   0x3   :  { %13 = vsyncpa [#allocation4], 0  ;;  %s466_s18 = smov [#allocation5]   ;;  %s467_s20 = smov [#allocation2]  }
   0x4   :  { %s31_s19 = sshll.u32 %s466_s18, 4  ;;  %s19_s21 = sshll.u32 %s467_s20, 4  ;;  %s32_s19 = int_to_ptr.vmem [resolvable:$true] %s31_s19  ;;  %s507_s21 = int_to_ptr.vmem [resolvable:$true] %s19_s21 }
   0x5   :  { %s348_s24 = scalar_lea.hbm %s599_s1, 256 }
   0x6   :  { %p349_p0 = scmp.ne.s32.totalorder %s599_s1, %s348_s24  ;;  %p352_p1 = scmp.lt.u32.totalorder %s348_s24, %s599_s1 }
   0x8   :  { %p354_p2 = pnand %p352_p1, %p349_p0 }
   0xa   :  { %357 = shalt.err (!%p354_p2)
}
   0xb   :  { %s358_s29 = scalar_lea.vmem %s32_s19, 256  ;;  %p363_p4 = scmp.lt.s32.totalorder %s32_s19, %s32_s19 }
   0xc   :  { %p359_p3 = scmp.ne.s32.totalorder %s32_s19, %s358_s29  ;;  %p364_p5 = scmp.lt.s32.totalorder %s358_s29, %s358_s29 }
   0xe   :  { %p365_p6 = por %p364_p5, %p363_p4 }
  0x10   :  { %p366_p7 = pnand %p365_p6, %p359_p3 }
  0x12   :  { %369 = shalt.err (!%p366_p7)
}
  0x13   :  { %s468_s30 = smov 128   ;;  %s469_s6 = smov 8  }
  0x14   :  { %37 = dma.hbm_to_vmem [thread:$0]  %s599_s1, 256, %s32_s19, [#allocation6], %s468_s30, %s468_s30, %s469_s6  }
  0x15   :  { %s370_s11 = scalar_lea.hbm %s598_s0, 256 }
  0x16   :  { %p371_p8 = scmp.ne.s32.totalorder %s598_s0, %s370_s11  ;;  %p374_p9 = scmp.lt.u32.totalorder %s370_s11, %s598_s0 }
  0x18   :  { %p376_p10 = pnand %p374_p9, %p371_p8 }
  0x1a   :  { %379 = shalt.err (!%p376_p10)
}
  0x1b   :  { %s380_s16 = scalar_lea.vmem %s507_s21, 256  ;;  %p385_p12 = scmp.lt.s32.totalorder %s507_s21, %s507_s21 }
  0x1c   :  { %p381_p11 = scmp.ne.s32.totalorder %s507_s21, %s380_s16  ;;  %p386_p13 = scmp.lt.s32.totalorder %s380_s16, %s380_s16 }
  0x1e   :  { %p387_p0 = por %p386_p13, %p385_p12 }
  0x20   :  { %p388_p1 = pnand %p387_p0, %p381_p11 }
  0x22   :  { %391 = shalt.err (!%p388_p1)
}
  0x23   :  { %25 = dma.hbm_to_vmem [thread:$0]  %s598_s0, 256, %s507_s21, [#allocation3], %s468_s30, %s468_s30, %s469_s6  }
  0x24   :  { %s470_s18 = smov [#allocation7]   ;;  %s392_s23 = scalar_lea.hbm %s600_s2, 128 }
  0x25   :  { %s43_s19 = sshll.u32 %s470_s18, 4  ;;  %p393_p2 = scmp.ne.s32.totalorder %s600_s2, %s392_s23  ;;  %s44_s19 = int_to_ptr.vmem [resolvable:$true] %s43_s19 }
  0x26   :  { %p396_p3 = scmp.lt.u32.totalorder %s392_s23, %s600_s2 }
  0x28   :  { %p398_p4 = pnand %p396_p3, %p393_p2 }
  0x2a   :  { %401 = shalt.err (!%p398_p4)
}
  0x2b   :  { %s402_s28 = scalar_lea.vmem %s44_s19, 128  ;;  %p407_p6 = scmp.lt.s32.totalorder %s44_s19, %s44_s19 }
  0x2c   :  { %p403_p5 = scmp.ne.s32.totalorder %s44_s19, %s402_s28  ;;  %p408_p7 = scmp.lt.s32.totalorder %s402_s28, %s402_s28 }
  0x2e   :  { %p409_p8 = por %p408_p7, %p407_p6 }
  0x30   :  { %p410_p9 = pnand %p409_p8, %p403_p5 }
  0x32   :  { %413 = shalt.err (!%p410_p9)
}
  0x33   :  { %s471_s0 = smov 64   ;;  %s472_s21 = smov 4  }
  0x34   :  { %49 = dma.hbm_to_vmem [thread:$0]  %s600_s2, 128, %s44_s19, [#allocation6], %s471_s0, %s471_s0, %s472_s21  }
  0x35   :  { %s473_s8 = smov [#allocation8]   ;;  %s414_s12 = scalar_lea.hbm %s601_s3, 256 }
  0x36   :  { %s55_s9 = sshll.u32 %s473_s8, 4  ;;  %p415_p10 = scmp.ne.s32.totalorder %s601_s3, %s414_s12  ;;  %s56_s9 = int_to_ptr.vmem [resolvable:$true] %s55_s9 }
  0x37   :  { %p418_p11 = scmp.lt.u32.totalorder %s414_s12, %s601_s3 }
  0x39   :  { %p420_p12 = pnand %p418_p11, %p415_p10 }
  0x3b   :  { %423 = shalt.err (!%p420_p12)
}
  0x3c   :  { %s424_s1 = scalar_lea.vmem %s56_s9, 256  ;;  %p429_p0 = scmp.lt.s32.totalorder %s56_s9, %s56_s9 }
  0x3d   :  { %p425_p13 = scmp.ne.s32.totalorder %s56_s9, %s424_s1  ;;  %p430_p1 = scmp.lt.s32.totalorder %s424_s1, %s424_s1 }
  0x3f   :  { %p431_p2 = por %p430_p1, %p429_p0 }
  0x41   :  { %p432_p3 = pnand %p431_p2, %p425_p13 }
  0x43   :  { %435 = shalt.err (!%p432_p3)
}
  0x44   :  { %61 = dma.hbm_to_vmem [thread:$0]  %s601_s3, 256, %s56_s9, [#allocation9], %s468_s30, %s468_s30, %s469_s6  }
  0x45   :  { %458 = dma.done.wait [#allocation3], 256  }
  0x46   :  { %459 = vsyncadd [#allocation3], 4294967040 }
  0x47   :  { %460 = dma.done.wait [#allocation6], 384  }
  0x48   :  { %461 = vsyncadd [#allocation6], 4294966912 }
  0x49   :  { %462 = dma.done.wait [#allocation9], 256  }
  0x4a   :  { %463 = vsyncadd [#allocation9], 4294967040  ;;  %vm79_vm0 = vcmask 130048   ;;  %v77_v0 = vld [vmem:[#allocation2] sm:$0xff]  ;;  %v78_v1 = vld [vmem:[#allocation2 + $0x8] sm:$0xff]  ;;  %v474_v20 = vmov 0.0  }
  0x4b   :  { %v80_v2 = vsel %vm79_vm0, %v77_v0, -inf  ;;  %v83_v3 = vsel %vm79_vm0, %v78_v1, -inf  ;;  %v115_v4 = vld [vmem:[#allocation8] sm:$0xff]  ;;  %v116_v5 = vld [vmem:[#allocation8 + $0x8] sm:$0xff]  ;;  %v106_v8 = vld [vmem:[#allocation5 + $0x8] sm:$0xff]  ;;  %314 = vmatprep.subr.bf16.mxu1 %v474_v20  ;;  %vm475_vm1 = vmmov 0  }
  0x4c   :  { %81 = vmax.xlane.f32.xlu0 %v80_v2  ;;  %v105_v6 = vld [vmem:[#allocation5] sm:$0xff]  ;;  %v320_v7 = vpack.c.bf16 %v116_v5, %v115_v4  ;;  %v335_v19 = vld [vmem:[#allocation7] sm:$0xff]   ;;  %316 = vmatprep.mubr.msk.bf16.mxu1 %vm475_vm1, %v474_v20  ;;  %v108_v23 = vmul.f32 %v106_v8, %v106_v8 }
  0x4d   :  { %311 = vmatprep.mubr.msk.f32.mxu0 %vm79_vm0, %v105_v6  ;;  %315 = vmatpush3.bf16.msra.mxu1 %v335_v19  ;;  %v107_v21 = vmul.f32 %v105_v6, %v105_v6  ;;  %v298_v34 = vld [vmem:[%s602_s4] ss:$0 sm:$0xff]  ;;  %s476_s4 = smov [#allocation10]  }
  0x4e   :  { %321 = vmatprep.subr.bf16.mxu0 %v320_v7  ;;  %v112_v24 = vsel %vm79_vm0, %v108_v23, 0.0  ;;  %s282_s19 = sshll.u32 %s476_s4, 4  ;;  %s283_s19 = int_to_ptr.vmem [resolvable:$true] %s282_s19 }
  0x4f   :  { %323 = vmatpush3.bf16.msra.mxu0 %v320_v7  ;;  %v109_v22 = vsel %vm79_vm0, %v107_v21, 0.0  ;;  %s436_s20 = scalar_lea.vmem %s283_s19, 256  ;;  %p441_p5 = scmp.lt.s32.totalorder %s283_s19, %s283_s19 }
  0x50   :  { %84 = vmax.xlane.f32.xlu0 %v83_v3  ;;  %p437_p4 = scmp.ne.s32.totalorder %s283_s19, %s436_s20  ;;  %p442_p6 = scmp.lt.s32.totalorder %s436_s20, %s436_s20 }
  0x52   :  { %312 = vmatmul.mubr.msk.f32.vlgmr.msra.gmra.mrb[0].mxu0 %vm79_vm0, %v106_v8  ;;  %p443_p7 = por %p442_p6, %p441_p5 }
  0x54   :  { %110 = vadd.xlane.f32.xlu0 %v109_v22  ;;  %p444_p8 = pnand %p443_p7, %p437_p4 }
  0xd9   :  { %v82_v9 = vpop.xlane.xlu0 %81 }
  0xda   :  { %v86_v10 = vsub.f32 %v77_v0, %v82_v9 }
  0xdc   :  { %v88_v11 = vmul.f32 1.442695, %v86_v10 }
  0xdd   :  { %v85_v12 = vpop.xlane.xlu0 %84 }
  0xde   :  { %336 = vpow2.f32 %v88_v11  ;;  %v87_v13 = vsub.f32 %v78_v1, %v85_v12 }
  0xe0   :  { %v90_v14 = vmul.f32 1.442695, %v87_v13 }
  0xe1   :  { %v111_v35 = vpop.xlane.xlu0 %110 }
  0xe2   :  { %338 = vpow2.f32 %v90_v14  ;;  %v205_v37 = vadd.f32 %v298_v34, %v111_v35 }
  0xe8   :  { %v337_v15 = vpop.eup %336 }
  0xe9   :  { %v92_v16 = vsel %vm79_vm0, %v337_v15, 0.0 }
  0xea   :  { %93 = vadd.xlane.f32.xlu1 %v92_v16 }
  0xec   :  { %v339_v17 = vpop.eup %338 }
  0xed   :  { %v95_v18 = vsel %vm79_vm0, %v339_v17, 0.0 }
  0xee   :  { %96 = vadd.xlane.f32.xlu1 %v95_v18 }
  0xf2   :  { %113 = vadd.xlane.f32.xlu1 %v112_v24 }
 0x125   :  { %v313_v25 = vpop.f32.mrb[0].mxu0 }
 0x126   :  { %v189_v26 = vpop.f32.mrb[1].mxu0 }
 0x127   :  { %v207_v39 = vadd.f32 %v205_v37, %v189_v26 }
 0x129   :  { %v209_v41 = vmax.f32 %v207_v39, 0.0 }
 0x12b   :  { %vm213_vm2 = vcmp.eq.f32.partialorder %v209_v41, inf  ;;  %v216_v47 = vand.u32 2147483648, %v209_v41  ;;  %vm215_vm4 = vcmp.eq.f32.partialorder %v209_v41, 0.0 }
 0x177   :  { %v94_v27 = vpop.xlane.xlu1 %93 }
 0x178   :  { %340 = vrcp.f32 %v94_v27 }
 0x17b   :  { %v97_v28 = vpop.xlane.xlu1 %96 }
 0x17c   :  { %342 = vrcp.f32 %v97_v28 }
 0x17d   :  { %344 = vrsqrt.f32 %v209_v41 }
 0x17f   :  { %v114_v36 = vpop.xlane.xlu1 %113 }
 0x180   :  { %v206_v38 = vadd.f32 %v298_v34, %v114_v36 }
 0x182   :  { %v341_v29 = vpop.eup %340  ;;  %v208_v40 = vadd.f32 %v313_v25, %v206_v38 }
 0x183   :  { %v100_v31 = vmul.f32 %v341_v29, %v337_v15 }
 0x184   :  { %v210_v42 = vmax.f32 %v208_v40, 0.0 }
 0x186   :  { %v343_v30 = vpop.eup %342  ;;  %346 = vrsqrt.f32 %v210_v42  ;;  %vm220_vm3 = vcmp.eq.f32.partialorder %v210_v42, inf  ;;  %v223_v49 = vand.u32 2147483648, %v210_v42  ;;  %vm222_vm5 = vcmp.eq.f32.partialorder %v210_v42, 0.0 }
 0x187   :  { %v101_v32 = vmul.f32 %v343_v30, %v339_v17  ;;  %v345_v43 = vpop.eup %344 }
 0x188   :  { %v212_v45 = vmul.f32 %v345_v43, %v209_v41 }
 0x189   :  { %v102_v33 = vpack.c.bf16 %v101_v32, %v100_v31 }
 0x18a   :  { %v214_v48 = vsel %vm213_vm2, %v209_v41, %v212_v45 }
 0x18b   :  { %317 = vmatmul.mubr.msk.bf16.vlgmr.msra.gmra.mrb[0].mxu1 %vm79_vm0, %v102_v33  ;;  %v217_v51 = vsel %vm215_vm4, %v216_v47, %v214_v48 }
 0x190   :  { %v347_v44 = vpop.eup %346 }
 0x191   :  { %v219_v46 = vmul.f32 %v347_v44, %v210_v42 }
 0x193   :  { %v221_v50 = vsel %vm220_vm3, %v210_v42, %v219_v46 }
 0x194   :  { %v224_v55 = vsel %vm222_vm5, %v223_v49, %v221_v50 }
 0x25e   :  { %v268_v52 = vpop.f32.mrb[0].mxu1 }
 0x25f   :  { %v269_v53 = vadd.f32 %v268_v52, %v217_v51  ;;  %v318_v54 = vpop.f32.mrb[1].mxu1 }
 0x260   :  { %v271_v56 = vpop.f32.mrb[2].mxu1 }
 0x261   :  { %275 = vst [vmem:[#allocation10] sm:$0xff] %v269_v53  ;;  %v272_v57 = vadd.f32 %v271_v56, %v224_v55  ;;  %v319_v58 = vpop.f32.mrb[3].mxu1 }
 0x263   :  { %276 = vst [vmem:[#allocation10 + $0x8] sm:$0xff] %v272_v57 }
 0x264   :  { %447 = shalt.err (!%p444_p8)
}
 0x265   :  { %s448_s24 = scalar_lea.hbm %s603_s5, 256 }
 0x266   :  { %p449_p9 = scmp.ne.s32.totalorder %s603_s5, %s448_s24  ;;  %p452_p10 = scmp.lt.u32.totalorder %s448_s24, %s603_s5 }
 0x268   :  { %p454_p11 = pnand %p452_p10, %p449_p9 }
 0x26a   :  { %457 = shalt.err (!%p454_p11)
}
 0x26b   :  { %288 = dma.vmem_to_hbm [thread:$0]  %s283_s19, 256, %s603_s5, [#allocation4], %s468_s30, %s468_s30, %s469_s6  }
 0x26c   :  { %464 = dma.done.wait [#allocation4], 256  }
 0x26d   :  { %465 = vsyncadd [#allocation4], 4294967040 }
 0x26e   :  { %292 = vsyncpa [#allocation3], 1 }
 0x26f   :  { %293 = vsyncpa [#allocation6], 1 }
 0x270   :  { %294 = vsyncpa [#allocation9], 1 }
 0x271   :  { %295 = vsyncpa [#allocation4], 1 }

</bundles_post_ra>
